<compile_context>
chip_gen: v7x
topology: tpu7x:2x2x1
jax: 0.10.0
libtpu: 0.0.40
codegen_flags: <defaults>
</compile_context>

<pallas_src>
import functools

import numpy as np
import jax
import jax.numpy as jnp
from jax import lax
from jax.experimental import pallas as pl
from jax.experimental.pallas import tpu as pltpu


# ----------------------------- configuration --------------------------------
SUB_NO = 4
E_NO = 16
I_NO = 16
T_SYN = 20
SYN_BASIS_NO = 2
T_DATA = 128

# Binary dendritic tree adjacency (root = subunit 0; children have higher idx).
C_DEN_NP = np.array(
    [[0, 1, 1, 0],
     [0, 0, 0, 1],
     [0, 0, 0, 0],
     [0, 0, 0, 0]], dtype=np.float32)


# ------------------------------ Pallas kernel -------------------------------
def _shglm_kernel(c_den_static, t_syn, basis_no,
                  s_ref,      # (E_no+I_no, T)   stacked transposed spike trains (VMEM)
                  c_ref,      # (2*sub_no, E_no+I_no) block-diag assignment     (VMEM)
                  p_ref,      # (2*sub_no, 1+2*B) packed [delta | tau_b | w_b]  (VMEM)
                  w_sub_ref,  # (sub_no,)  SMEM scalars
                  v_o_ref,    # (1,)       SMEM scalar
                  out_ref):   # (1, T)     lane-dense output
    T = s_ref.shape[1]
    R = c_ref.shape[0]                      # 2 * sub_no : rows = [exc | inh]
    sub_no = c_den_static.shape[0]

    # ---- per-subunit synaptic kernels, (R, T_syn) -------------------------
    t_raw = lax.broadcasted_iota(jnp.int32, (R, t_syn), 1).astype(jnp.float32)
    t_shift = jnp.maximum(t_raw - jnp.exp(p_ref[:, 0:1]), 0.0)       # (R, T_syn)
    kern = jnp.zeros((R, t_syn), jnp.float32)
    for b in range(basis_no):                                        # static, tiny
        tb = t_shift / jnp.exp(p_ref[:, 1 + b:2 + b])                # (R, T_syn)
        kern = kern + tb * jnp.exp(-tb) * p_ref[:, 1 + basis_no + b:2 + basis_no + b]

    # ---- fused lane-dense input-current matmul (one MXU pass) -------------
    # rows 0..sub_no-1 : S_e @ C_syn_e.T (transposed) ; rows sub_no.. : inhibitory
    cur = jnp.dot(c_ref[...], s_ref[...],
                  preferred_element_type=jnp.float32)                # (R, T)

    # ---- causal depthwise conv along the lane (time) axis ------------------
    # acc[r, t] = sum_m kern[r, m] * cur[r, t-m]   (zero for t-m < 0)
    col = lax.broadcasted_iota(jnp.int32, (R, T), 1)
    acc = kern[:, 0:1] * cur
    for m in range(1, t_syn):                 # static loop; single-vreg lane rolls
        shifted = jnp.where(col >= m, pltpu.roll(cur, m, axis=1), 0.0)
        acc = acc + kern[:, m:m + 1] * shifted

    syn = acc[0:sub_no, :] + acc[sub_no:R, :]                        # (sub_no, T)

    # ---- subunit tree nonlinearity (leaf -> root, same order as torch) ----
    cols = {}
    for s in reversed(range(sub_no)):
        a = syn[s:s + 1, :]                                          # (1, T)
        for j in np.where(c_den_static[s] == 1)[0]:
            j = int(j)
            if j in cols:                     # unprocessed children are 0 in torch
                a = a + cols[j] * w_sub_ref[j]
        cols[s] = jnp.tanh(a)

    out_ref[...] = cols[0] * w_sub_ref[0] + v_o_ref[0]


# --------------------------------- wrapper -----------------------------------
def shglm_forward(S_e, S_i, C_syn_e, C_syn_i, W_syn, Tau_syn, Delta_syn,
                  W_sub, V_o, *, C_den_np=C_DEN_NP,
                  T_syn=T_SYN, syn_basis_no=SYN_BASIS_NO):
    """Pallas implementation of gumbel_NS_shGLM.forward. Returns (T,) float32."""
    T = S_e.shape[0]
    sub_no = C_den_np.shape[0]
    E_no = S_e.shape[1]
    I_no = S_i.shape[1]
    R = 2 * sub_no
    B = syn_basis_no

    # --- layout plumbing (plain JAX): lane-major stacked spikes ------------
    s_stack = jnp.concatenate(
        [jnp.asarray(S_e, jnp.float32).T, jnp.asarray(S_i, jnp.float32).T],
        axis=0)                                                   # (E+I, T)

    # block-diagonal synapse->subunit assignment, (2*sub_no, E+I)
    c_e = jnp.asarray(C_syn_e, jnp.float32)                       # (sub_no, E)
    c_i = jnp.asarray(C_syn_i, jnp.float32)                       # (sub_no, I)
    c_block = jnp.zeros((R, E_no + I_no), jnp.float32)
    c_block = c_block.at[:sub_no, :E_no].set(c_e)
    c_block = c_block.at[sub_no:, E_no:].set(c_i)

    # packed kernel-construction params, (2*sub_no, 1 + 2*B):
    #   col 0        : Delta  (rows 0..sub_no-1 -> exc, rows sub_no.. -> inh)
    #   cols 1..B    : Tau    per basis
    #   cols B+1..2B : W_syn  per basis
    W = jnp.asarray(W_syn, jnp.float32)                           # (sub_no, B, 2)
    Tau = jnp.asarray(Tau_syn, jnp.float32)                       # (B, 2)
    Delta = jnp.asarray(Delta_syn, jnp.float32)                   # (sub_no, 2)
    delta_col = jnp.concatenate([Delta[:, 0], Delta[:, 1]])[:, None]       # (R,1)
    tau_cols = jnp.concatenate(
        [jnp.tile(Tau[:, 0][None, :], (sub_no, 1)),
         jnp.tile(Tau[:, 1][None, :], (sub_no, 1))], axis=0)               # (R,B)
    w_cols = jnp.concatenate([W[:, :, 0], W[:, :, 1]], axis=0)             # (R,B)
    params = jnp.concatenate([delta_col, tau_cols, w_cols], axis=1)        # (R,1+2B)

    w_sub = jnp.asarray(W_sub, jnp.float32).reshape(sub_no)       # SMEM scalars
    v_o = jnp.asarray(V_o, jnp.float32).reshape(1)

    kernel = functools.partial(_shglm_kernel, C_den_np, T_syn, B)
    vmem = pl.BlockSpec(memory_space=pltpu.MemorySpace.VMEM)
    smem = pl.BlockSpec(memory_space=pltpu.MemorySpace.SMEM)

    out = pl.pallas_call(
        kernel,
        out_shape=jax.ShapeDtypeStruct((1, T), jnp.float32),      # lane-dense
        in_specs=[vmem, vmem, vmem, smem, smem],
        out_specs=vmem,
    )(s_stack, c_block, params, w_sub, v_o)
    # TODO(synk): if T grows well beyond 128, tile the time axis with a grid
    # (T_syn-1 halo) and add a "parallel" batch axis to use both v7x TCs.
    return out.reshape(T)


# ------------------------- pure-numpy reference ------------------------------
def reference_forward(S_e, S_i, C_den, C_syn_e, C_syn_i, T_syn, B,
                      W_syn, Tau, Delta, W_sub, V_o):
    S_e = np.asarray(S_e, np.float64)
    S_i = np.asarray(S_i, np.float64)
    T = S_e.shape[0]
    sub_no = C_den.shape[0]
    syn_in = np.zeros((T, sub_no))
    t_raw = np.arange(T_syn, dtype=np.float64)
    for s in range(sub_no):
        de, di = np.exp(Delta[s, 0]), np.exp(Delta[s, 1])
        te = np.maximum(t_raw - de, 0.0)
        ti = np.maximum(t_raw - di, 0.0)
        ke = np.zeros(T_syn)
        ki = np.zeros(T_syn)
        for b in range(B):
            taue, taui = np.exp(Tau[b, 0]), np.exp(Tau[b, 1])
            tet, tit = te / taue, ti / taui
            ke += tet * np.exp(-tet) * W_syn[s, b, 0]
            ki += tit * np.exp(-tit) * W_syn[s, b, 1]
        ine = S_e @ np.asarray(C_syn_e, np.float64)[s]
        ini = S_i @ np.asarray(C_syn_i, np.float64)[s]
        fe = np.convolve(ine, ke, mode="full")[:T]
        fi = np.convolve(ini, ki, mode="full")[:T]
        syn_in[:, s] = fe + fi
    sub_out = np.zeros((T, sub_no))
    for s in range(sub_no):
        idx = sub_no - 1 - s
        leaves = np.where(C_den[idx] == 1)[0]
        if leaves.size == 0:
            sub_out[:, idx] = np.tanh(syn_in[:, idx])
        else:
            leaf_in = sub_out[:, leaves] * np.asarray(W_sub)[leaves]
            sub_out[:, idx] = np.tanh(syn_in[:, idx] + leaf_in.sum(1))
    return sub_out[:, 0] * W_sub[0] + V_o[0]


# ----------------------------------- main ------------------------------------
if __name__ == "__main__":
    key = jax.random.PRNGKey(0)
    k1, k2, k3, k4, k5, k6 = jax.random.split(key, 6)

    # Parameters (deterministic, shapes per the module __init__).
    W_syn = 0.1 * jax.random.normal(k1, (SUB_NO, SYN_BASIS_NO, 2), jnp.float32)
    Tau_syn = jnp.tile(jnp.arange(SYN_BASIS_NO, dtype=jnp.float32)[:, None], (1, 2))
    Delta_syn = jax.random.uniform(k2, (SUB_NO, 2), jnp.float32)
    W_sub = jax.random.uniform(k3, (SUB_NO,), jnp.float32)
    V_o = jax.random.normal(k4, (1,), jnp.float32)
    # Theta = zeros(SUB_NO) is defined in __init__ but unused by forward().

    # Synapse -> subunit assignment matrices (binary).
    C_syn_e = jnp.asarray(
        (np.arange(E_NO)[None, :] % SUB_NO) == np.arange(SUB_NO)[:, None],
        jnp.float32)
    C_syn_i = jnp.asarray(
        (np.arange(I_NO)[None, :] % SUB_NO) == np.arange(SUB_NO)[:, None],
        jnp.float32)

    # Inputs: binary spike trains (T, E_no) / (T, I_no).
    S_e = (jax.random.uniform(k5, (T_DATA, E_NO)) < 0.2).astype(jnp.float32)
    S_i = (jax.random.uniform(k6, (T_DATA, I_NO)) < 0.2).astype(jnp.float32)

    out = shglm_forward(S_e, S_i, C_syn_e, C_syn_i, W_syn, Tau_syn,
                        Delta_syn, W_sub, V_o)
    out = jax.block_until_ready(out)

    ref = reference_forward(np.asarray(S_e), np.asarray(S_i), C_DEN_NP,
                            np.asarray(C_syn_e), np.asarray(C_syn_i),
                            T_SYN, SYN_BASIS_NO,
                            np.asarray(W_syn), np.asarray(Tau_syn),
                            np.asarray(Delta_syn), np.asarray(W_sub),
                            np.asarray(V_o))

    np.testing.assert_allclose(np.asarray(out), ref, rtol=1e-3, atol=1e-3)
    assert out.shape == (T_DATA,)
    print("KERNEL_OK")
</pallas_src>

<mosaic_0001>
module attributes {stable_mosaic.version = 11 : i64} {
  func.func @_shglm_kernel(%arg0: memref<32x128xf32, #tpu.memory_space<vmem>>, %arg1: memref<8x32xf32, #tpu.memory_space<vmem>>, %arg2: memref<8x5xf32, #tpu.memory_space<vmem>>, %arg3: memref<4xf32, #tpu.memory_space<smem>>, %arg4: memref<1xf32, #tpu.memory_space<smem>>, %arg5: memref<1x128xf32, #tpu.memory_space<vmem>>) attributes {dimension_semantics = [], scalar_prefetch = 0 : i64, scratch_operands = 0 : i64, tpu.core_type = #tpu.core_type<tc>} {
    %0 = tpu.iota {dimensions = array<i32: 1>} : vector<8x20xi32>
    %1 = arith.sitofp %0 : vector<8x20xi32> to vector<8x20xf32>
    %c0 = arith.constant 0 : index
    %c0_0 = arith.constant 0 : index
    %2 = vector.load %arg2[%c0, %c0_0] : memref<8x5xf32, #tpu.memory_space<vmem>>, vector<8x1xf32>
    %3 = math.exp %2 : vector<8x1xf32>
    %4 = vector.broadcast %3 : vector<8x1xf32> to vector<8x20xf32>
    %5 = arith.subf %1, %4 : vector<8x20xf32>
    %cst = arith.constant 0.000000e+00 : f32
    %6 = vector.broadcast %cst : f32 to vector<8x20xf32>
    %7 = arith.maximumf %5, %6 : vector<8x20xf32>
    %cst_1 = arith.constant 0.000000e+00 : f32
    %8 = vector.broadcast %cst_1 : f32 to vector<8x20xf32>
    %c0_2 = arith.constant 0 : index
    %c1 = arith.constant 1 : index
    %9 = vector.load %arg2[%c0_2, %c1] : memref<8x5xf32, #tpu.memory_space<vmem>>, vector<8x1xf32>
    %10 = math.exp %9 : vector<8x1xf32>
    %11 = vector.broadcast %10 : vector<8x1xf32> to vector<8x20xf32>
    %12 = arith.divf %7, %11 : vector<8x20xf32>
    %cst_3 = arith.constant 0.000000e+00 : f32
    %13 = vector.broadcast %cst_3 : f32 to vector<8x20xf32>
    %14 = arith.subf %13, %12 : vector<8x20xf32>
    %15 = math.exp %14 : vector<8x20xf32>
    %16 = arith.mulf %12, %15 : vector<8x20xf32>
    %c0_4 = arith.constant 0 : index
    %c3 = arith.constant 3 : index
    %17 = vector.load %arg2[%c0_4, %c3] : memref<8x5xf32, #tpu.memory_space<vmem>>, vector<8x1xf32>
    %18 = vector.broadcast %17 : vector<8x1xf32> to vector<8x20xf32>
    %19 = arith.mulf %16, %18 : vector<8x20xf32>
    %20 = arith.addf %8, %19 : vector<8x20xf32>
    %c0_5 = arith.constant 0 : index
    %c2 = arith.constant 2 : index
    %21 = vector.load %arg2[%c0_5, %c2] : memref<8x5xf32, #tpu.memory_space<vmem>>, vector<8x1xf32>
    %22 = math.exp %21 : vector<8x1xf32>
    %23 = vector.broadcast %22 : vector<8x1xf32> to vector<8x20xf32>
    %24 = arith.divf %7, %23 : vector<8x20xf32>
    %cst_6 = arith.constant 0.000000e+00 : f32
    %25 = vector.broadcast %cst_6 : f32 to vector<8x20xf32>
    %26 = arith.subf %25, %24 : vector<8x20xf32>
    %27 = math.exp %26 : vector<8x20xf32>
    %28 = arith.mulf %24, %27 : vector<8x20xf32>
    %c0_7 = arith.constant 0 : index
    %c4 = arith.constant 4 : index
    %29 = vector.load %arg2[%c0_7, %c4] : memref<8x5xf32, #tpu.memory_space<vmem>>, vector<8x1xf32>
    %30 = vector.broadcast %29 : vector<8x1xf32> to vector<8x20xf32>
    %31 = arith.mulf %28, %30 : vector<8x20xf32>
    %32 = arith.addf %20, %31 : vector<8x20xf32>
    %c0_8 = arith.constant 0 : index
    %c0_9 = arith.constant 0 : index
    %33 = vector.load %arg1[%c0_8, %c0_9] : memref<8x32xf32, #tpu.memory_space<vmem>>, vector<8x32xf32>
    %c0_10 = arith.constant 0 : index
    %c0_11 = arith.constant 0 : index
    %34 = vector.load %arg0[%c0_10, %c0_11] : memref<32x128xf32, #tpu.memory_space<vmem>>, vector<32x128xf32>
    %cst_12 = arith.constant dense<0.000000e+00> : vector<8x128xf32>
    %35 = tpu.matmul %33, %34, %cst_12 {dimension_numbers = #tpu.dot_dimension_numbers<[1], [0], [0], [1], [0, 0, 1, 1], [], []>} : vector<8x32xf32>, vector<32x128xf32>, vector<8x128xf32> -> vector<8x128xf32>
    %36 = tpu.iota {dimensions = array<i32: 1>} : vector<8x128xi32>
    %37 = vector.extract_strided_slice %32 {offsets = [0, 0], sizes = [8, 1], strides = [1, 1]} : vector<8x20xf32> to vector<8x1xf32>
    %38 = vector.broadcast %37 : vector<8x1xf32> to vector<8x128xf32>
    %39 = arith.mulf %38, %35 : vector<8x128xf32>
    %c1_i32 = arith.constant 1 : i32
    %40 = vector.broadcast %c1_i32 : i32 to vector<8x128xi32>
    %41 = arith.cmpi sge, %36, %40 : vector<8x128xi32>
    %c1_i32_13 = arith.constant 1 : i32
    %42 = tpu.dynamic_rotate %35 by %c1_i32_13 dim 1 : vector<8x128xf32>, i32 -> vector<8x128xf32>
    %cst_14 = arith.constant 0.000000e+00 : f32
    %43 = vector.broadcast %cst_14 : f32 to vector<8x128xf32>
    %44 = arith.select %41, %42, %43 : vector<8x128xi1>, vector<8x128xf32>
    %45 = vector.extract_strided_slice %32 {offsets = [0, 1], sizes = [8, 1], strides = [1, 1]} : vector<8x20xf32> to vector<8x1xf32>
    %46 = vector.broadcast %45 : vector<8x1xf32> to vector<8x128xf32>
    %47 = arith.mulf %46, %44 : vector<8x128xf32>
    %48 = arith.addf %39, %47 : vector<8x128xf32>
    %c2_i32 = arith.constant 2 : i32
    %49 = vector.broadcast %c2_i32 : i32 to vector<8x128xi32>
    %50 = arith.cmpi sge, %36, %49 : vector<8x128xi32>
    %c2_i32_15 = arith.constant 2 : i32
    %51 = tpu.dynamic_rotate %35 by %c2_i32_15 dim 1 : vector<8x128xf32>, i32 -> vector<8x128xf32>
    %cst_16 = arith.constant 0.000000e+00 : f32
    %52 = vector.broadcast %cst_16 : f32 to vector<8x128xf32>
    %53 = arith.select %50, %51, %52 : vector<8x128xi1>, vector<8x128xf32>
    %54 = vector.extract_strided_slice %32 {offsets = [0, 2], sizes = [8, 1], strides = [1, 1]} : vector<8x20xf32> to vector<8x1xf32>
    %55 = vector.broadcast %54 : vector<8x1xf32> to vector<8x128xf32>
    %56 = arith.mulf %55, %53 : vector<8x128xf32>
    %57 = arith.addf %48, %56 : vector<8x128xf32>
    %c3_i32 = arith.constant 3 : i32
    %58 = vector.broadcast %c3_i32 : i32 to vector<8x128xi32>
    %59 = arith.cmpi sge, %36, %58 : vector<8x128xi32>
    %c3_i32_17 = arith.constant 3 : i32
    %60 = tpu.dynamic_rotate %35 by %c3_i32_17 dim 1 : vector<8x128xf32>, i32 -> vector<8x128xf32>
    %cst_18 = arith.constant 0.000000e+00 : f32
    %61 = vector.broadcast %cst_18 : f32 to vector<8x128xf32>
    %62 = arith.select %59, %60, %61 : vector<8x128xi1>, vector<8x128xf32>
    %63 = vector.extract_strided_slice %32 {offsets = [0, 3], sizes = [8, 1], strides = [1, 1]} : vector<8x20xf32> to vector<8x1xf32>
    %64 = vector.broadcast %63 : vector<8x1xf32> to vector<8x128xf32>
    %65 = arith.mulf %64, %62 : vector<8x128xf32>
    %66 = arith.addf %57, %65 : vector<8x128xf32>
    %c4_i32 = arith.constant 4 : i32
    %67 = vector.broadcast %c4_i32 : i32 to vector<8x128xi32>
    %68 = arith.cmpi sge, %36, %67 : vector<8x128xi32>
    %c4_i32_19 = arith.constant 4 : i32
    %69 = tpu.dynamic_rotate %35 by %c4_i32_19 dim 1 : vector<8x128xf32>, i32 -> vector<8x128xf32>
    %cst_20 = arith.constant 0.000000e+00 : f32
    %70 = vector.broadcast %cst_20 : f32 to vector<8x128xf32>
    %71 = arith.select %68, %69, %70 : vector<8x128xi1>, vector<8x128xf32>
    %72 = vector.extract_strided_slice %32 {offsets = [0, 4], sizes = [8, 1], strides = [1, 1]} : vector<8x20xf32> to vector<8x1xf32>
    %73 = vector.broadcast %72 : vector<8x1xf32> to vector<8x128xf32>
    %74 = arith.mulf %73, %71 : vector<8x128xf32>
    %75 = arith.addf %66, %74 : vector<8x128xf32>
    %c5_i32 = arith.constant 5 : i32
    %76 = vector.broadcast %c5_i32 : i32 to vector<8x128xi32>
    %77 = arith.cmpi sge, %36, %76 : vector<8x128xi32>
    %c5_i32_21 = arith.constant 5 : i32
    %78 = tpu.dynamic_rotate %35 by %c5_i32_21 dim 1 : vector<8x128xf32>, i32 -> vector<8x128xf32>
    %cst_22 = arith.constant 0.000000e+00 : f32
    %79 = vector.broadcast %cst_22 : f32 to vector<8x128xf32>
    %80 = arith.select %77, %78, %79 : vector<8x128xi1>, vector<8x128xf32>
    %81 = vector.extract_strided_slice %32 {offsets = [0, 5], sizes = [8, 1], strides = [1, 1]} : vector<8x20xf32> to vector<8x1xf32>
    %82 = vector.broadcast %81 : vector<8x1xf32> to vector<8x128xf32>
    %83 = arith.mulf %82, %80 : vector<8x128xf32>
    %84 = arith.addf %75, %83 : vector<8x128xf32>
    %c6_i32 = arith.constant 6 : i32
    %85 = vector.broadcast %c6_i32 : i32 to vector<8x128xi32>
    %86 = arith.cmpi sge, %36, %85 : vector<8x128xi32>
    %c6_i32_23 = arith.constant 6 : i32
    %87 = tpu.dynamic_rotate %35 by %c6_i32_23 dim 1 : vector<8x128xf32>, i32 -> vector<8x128xf32>
    %cst_24 = arith.constant 0.000000e+00 : f32
    %88 = vector.broadcast %cst_24 : f32 to vector<8x128xf32>
    %89 = arith.select %86, %87, %88 : vector<8x128xi1>, vector<8x128xf32>
    %90 = vector.extract_strided_slice %32 {offsets = [0, 6], sizes = [8, 1], strides = [1, 1]} : vector<8x20xf32> to vector<8x1xf32>
    %91 = vector.broadcast %90 : vector<8x1xf32> to vector<8x128xf32>
    %92 = arith.mulf %91, %89 : vector<8x128xf32>
    %93 = arith.addf %84, %92 : vector<8x128xf32>
    %c7_i32 = arith.constant 7 : i32
    %94 = vector.broadcast %c7_i32 : i32 to vector<8x128xi32>
    %95 = arith.cmpi sge, %36, %94 : vector<8x128xi32>
    %c7_i32_25 = arith.constant 7 : i32
    %96 = tpu.dynamic_rotate %35 by %c7_i32_25 dim 1 : vector<8x128xf32>, i32 -> vector<8x128xf32>
    %cst_26 = arith.constant 0.000000e+00 : f32
    %97 = vector.broadcast %cst_26 : f32 to vector<8x128xf32>
    %98 = arith.select %95, %96, %97 : vector<8x128xi1>, vector<8x128xf32>
    %99 = vector.extract_strided_slice %32 {offsets = [0, 7], sizes = [8, 1], strides = [1, 1]} : vector<8x20xf32> to vector<8x1xf32>
    %100 = vector.broadcast %99 : vector<8x1xf32> to vector<8x128xf32>
    %101 = arith.mulf %100, %98 : vector<8x128xf32>
    %102 = arith.addf %93, %101 : vector<8x128xf32>
    %c8_i32 = arith.constant 8 : i32
    %103 = vector.broadcast %c8_i32 : i32 to vector<8x128xi32>
    %104 = arith.cmpi sge, %36, %103 : vector<8x128xi32>
    %c8_i32_27 = arith.constant 8 : i32
    %105 = tpu.dynamic_rotate %35 by %c8_i32_27 dim 1 : vector<8x128xf32>, i32 -> vector<8x128xf32>
    %cst_28 = arith.constant 0.000000e+00 : f32
    %106 = vector.broadcast %cst_28 : f32 to vector<8x128xf32>
    %107 = arith.select %104, %105, %106 : vector<8x128xi1>, vector<8x128xf32>
    %108 = vector.extract_strided_slice %32 {offsets = [0, 8], sizes = [8, 1], strides = [1, 1]} : vector<8x20xf32> to vector<8x1xf32>
    %109 = vector.broadcast %108 : vector<8x1xf32> to vector<8x128xf32>
    %110 = arith.mulf %109, %107 : vector<8x128xf32>
    %111 = arith.addf %102, %110 : vector<8x128xf32>
    %c9_i32 = arith.constant 9 : i32
    %112 = vector.broadcast %c9_i32 : i32 to vector<8x128xi32>
    %113 = arith.cmpi sge, %36, %112 : vector<8x128xi32>
    %c9_i32_29 = arith.constant 9 : i32
    %114 = tpu.dynamic_rotate %35 by %c9_i32_29 dim 1 : vector<8x128xf32>, i32 -> vector<8x128xf32>
    %cst_30 = arith.constant 0.000000e+00 : f32
    %115 = vector.broadcast %cst_30 : f32 to vector<8x128xf32>
    %116 = arith.select %113, %114, %115 : vector<8x128xi1>, vector<8x128xf32>
    %117 = vector.extract_strided_slice %32 {offsets = [0, 9], sizes = [8, 1], strides = [1, 1]} : vector<8x20xf32> to vector<8x1xf32>
    %118 = vector.broadcast %117 : vector<8x1xf32> to vector<8x128xf32>
    %119 = arith.mulf %118, %116 : vector<8x128xf32>
    %120 = arith.addf %111, %119 : vector<8x128xf32>
    %c10_i32 = arith.constant 10 : i32
    %121 = vector.broadcast %c10_i32 : i32 to vector<8x128xi32>
    %122 = arith.cmpi sge, %36, %121 : vector<8x128xi32>
    %c10_i32_31 = arith.constant 10 : i32
    %123 = tpu.dynamic_rotate %35 by %c10_i32_31 dim 1 : vector<8x128xf32>, i32 -> vector<8x128xf32>
    %cst_32 = arith.constant 0.000000e+00 : f32
    %124 = vector.broadcast %cst_32 : f32 to vector<8x128xf32>
    %125 = arith.select %122, %123, %124 : vector<8x128xi1>, vector<8x128xf32>
    %126 = vector.extract_strided_slice %32 {offsets = [0, 10], sizes = [8, 1], strides = [1, 1]} : vector<8x20xf32> to vector<8x1xf32>
    %127 = vector.broadcast %126 : vector<8x1xf32> to vector<8x128xf32>
    %128 = arith.mulf %127, %125 : vector<8x128xf32>
    %129 = arith.addf %120, %128 : vector<8x128xf32>
    %c11_i32 = arith.constant 11 : i32
    %130 = vector.broadcast %c11_i32 : i32 to vector<8x128xi32>
    %131 = arith.cmpi sge, %36, %130 : vector<8x128xi32>
    %c11_i32_33 = arith.constant 11 : i32
    %132 = tpu.dynamic_rotate %35 by %c11_i32_33 dim 1 : vector<8x128xf32>, i32 -> vector<8x128xf32>
    %cst_34 = arith.constant 0.000000e+00 : f32
    %133 = vector.broadcast %cst_34 : f32 to vector<8x128xf32>
    %134 = arith.select %131, %132, %133 : vector<8x128xi1>, vector<8x128xf32>
    %135 = vector.extract_strided_slice %32 {offsets = [0, 11], sizes = [8, 1], strides = [1, 1]} : vector<8x20xf32> to vector<8x1xf32>
    %136 = vector.broadcast %135 : vector<8x1xf32> to vector<8x128xf32>
    %137 = arith.mulf %136, %134 : vector<8x128xf32>
    %138 = arith.addf %129, %137 : vector<8x128xf32>
    %c12_i32 = arith.constant 12 : i32
    %139 = vector.broadcast %c12_i32 : i32 to vector<8x128xi32>
    %140 = arith.cmpi sge, %36, %139 : vector<8x128xi32>
    %c12_i32_35 = arith.constant 12 : i32
    %141 = tpu.dynamic_rotate %35 by %c12_i32_35 dim 1 : vector<8x128xf32>, i32 -> vector<8x128xf32>
    %cst_36 = arith.constant 0.000000e+00 : f32
    %142 = vector.broadcast %cst_36 : f32 to vector<8x128xf32>
    %143 = arith.select %140, %141, %142 : vector<8x128xi1>, vector<8x128xf32>
    %144 = vector.extract_strided_slice %32 {offsets = [0, 12], sizes = [8, 1], strides = [1, 1]} : vector<8x20xf32> to vector<8x1xf32>
    %145 = vector.broadcast %144 : vector<8x1xf32> to vector<8x128xf32>
    %146 = arith.mulf %145, %143 : vector<8x128xf32>
    %147 = arith.addf %138, %146 : vector<8x128xf32>
    %c13_i32 = arith.constant 13 : i32
    %148 = vector.broadcast %c13_i32 : i32 to vector<8x128xi32>
    %149 = arith.cmpi sge, %36, %148 : vector<8x128xi32>
    %c13_i32_37 = arith.constant 13 : i32
    %150 = tpu.dynamic_rotate %35 by %c13_i32_37 dim 1 : vector<8x128xf32>, i32 -> vector<8x128xf32>
    %cst_38 = arith.constant 0.000000e+00 : f32
    %151 = vector.broadcast %cst_38 : f32 to vector<8x128xf32>
    %152 = arith.select %149, %150, %151 : vector<8x128xi1>, vector<8x128xf32>
    %153 = vector.extract_strided_slice %32 {offsets = [0, 13], sizes = [8, 1], strides = [1, 1]} : vector<8x20xf32> to vector<8x1xf32>
    %154 = vector.broadcast %153 : vector<8x1xf32> to vector<8x128xf32>
    %155 = arith.mulf %154, %152 : vector<8x128xf32>
    %156 = arith.addf %147, %155 : vector<8x128xf32>
    %c14_i32 = arith.constant 14 : i32
    %157 = vector.broadcast %c14_i32 : i32 to vector<8x128xi32>
    %158 = arith.cmpi sge, %36, %157 : vector<8x128xi32>
    %c14_i32_39 = arith.constant 14 : i32
    %159 = tpu.dynamic_rotate %35 by %c14_i32_39 dim 1 : vector<8x128xf32>, i32 -> vector<8x128xf32>
    %cst_40 = arith.constant 0.000000e+00 : f32
    %160 = vector.broadcast %cst_40 : f32 to vector<8x128xf32>
    %161 = arith.select %158, %159, %160 : vector<8x128xi1>, vector<8x128xf32>
    %162 = vector.extract_strided_slice %32 {offsets = [0, 14], sizes = [8, 1], strides = [1, 1]} : vector<8x20xf32> to vector<8x1xf32>
    %163 = vector.broadcast %162 : vector<8x1xf32> to vector<8x128xf32>
    %164 = arith.mulf %163, %161 : vector<8x128xf32>
    %165 = arith.addf %156, %164 : vector<8x128xf32>
    %c15_i32 = arith.constant 15 : i32
    %166 = vector.broadcast %c15_i32 : i32 to vector<8x128xi32>
    %167 = arith.cmpi sge, %36, %166 : vector<8x128xi32>
    %c15_i32_41 = arith.constant 15 : i32
    %168 = tpu.dynamic_rotate %35 by %c15_i32_41 dim 1 : vector<8x128xf32>, i32 -> vector<8x128xf32>
    %cst_42 = arith.constant 0.000000e+00 : f32
    %169 = vector.broadcast %cst_42 : f32 to vector<8x128xf32>
    %170 = arith.select %167, %168, %169 : vector<8x128xi1>, vector<8x128xf32>
    %171 = vector.extract_strided_slice %32 {offsets = [0, 15], sizes = [8, 1], strides = [1, 1]} : vector<8x20xf32> to vector<8x1xf32>
    %172 = vector.broadcast %171 : vector<8x1xf32> to vector<8x128xf32>
    %173 = arith.mulf %172, %170 : vector<8x128xf32>
    %174 = arith.addf %165, %173 : vector<8x128xf32>
    %c16_i32 = arith.constant 16 : i32
    %175 = vector.broadcast %c16_i32 : i32 to vector<8x128xi32>
    %176 = arith.cmpi sge, %36, %175 : vector<8x128xi32>
    %c16_i32_43 = arith.constant 16 : i32
    %177 = tpu.dynamic_rotate %35 by %c16_i32_43 dim 1 : vector<8x128xf32>, i32 -> vector<8x128xf32>
    %cst_44 = arith.constant 0.000000e+00 : f32
    %178 = vector.broadcast %cst_44 : f32 to vector<8x128xf32>
    %179 = arith.select %176, %177, %178 : vector<8x128xi1>, vector<8x128xf32>
    %180 = vector.extract_strided_slice %32 {offsets = [0, 16], sizes = [8, 1], strides = [1, 1]} : vector<8x20xf32> to vector<8x1xf32>
    %181 = vector.broadcast %180 : vector<8x1xf32> to vector<8x128xf32>
    %182 = arith.mulf %181, %179 : vector<8x128xf32>
    %183 = arith.addf %174, %182 : vector<8x128xf32>
    %c17_i32 = arith.constant 17 : i32
    %184 = vector.broadcast %c17_i32 : i32 to vector<8x128xi32>
    %185 = arith.cmpi sge, %36, %184 : vector<8x128xi32>
    %c17_i32_45 = arith.constant 17 : i32
    %186 = tpu.dynamic_rotate %35 by %c17_i32_45 dim 1 : vector<8x128xf32>, i32 -> vector<8x128xf32>
    %cst_46 = arith.constant 0.000000e+00 : f32
    %187 = vector.broadcast %cst_46 : f32 to vector<8x128xf32>
    %188 = arith.select %185, %186, %187 : vector<8x128xi1>, vector<8x128xf32>
    %189 = vector.extract_strided_slice %32 {offsets = [0, 17], sizes = [8, 1], strides = [1, 1]} : vector<8x20xf32> to vector<8x1xf32>
    %190 = vector.broadcast %189 : vector<8x1xf32> to vector<8x128xf32>
    %191 = arith.mulf %190, %188 : vector<8x128xf32>
    %192 = arith.addf %183, %191 : vector<8x128xf32>
    %c18_i32 = arith.constant 18 : i32
    %193 = vector.broadcast %c18_i32 : i32 to vector<8x128xi32>
    %194 = arith.cmpi sge, %36, %193 : vector<8x128xi32>
    %c18_i32_47 = arith.constant 18 : i32
    %195 = tpu.dynamic_rotate %35 by %c18_i32_47 dim 1 : vector<8x128xf32>, i32 -> vector<8x128xf32>
    %cst_48 = arith.constant 0.000000e+00 : f32
    %196 = vector.broadcast %cst_48 : f32 to vector<8x128xf32>
    %197 = arith.select %194, %195, %196 : vector<8x128xi1>, vector<8x128xf32>
    %198 = vector.extract_strided_slice %32 {offsets = [0, 18], sizes = [8, 1], strides = [1, 1]} : vector<8x20xf32> to vector<8x1xf32>
    %199 = vector.broadcast %198 : vector<8x1xf32> to vector<8x128xf32>
    %200 = arith.mulf %199, %197 : vector<8x128xf32>
    %201 = arith.addf %192, %200 : vector<8x128xf32>
    %c19_i32 = arith.constant 19 : i32
    %202 = vector.broadcast %c19_i32 : i32 to vector<8x128xi32>
    %203 = arith.cmpi sge, %36, %202 : vector<8x128xi32>
    %c19_i32_49 = arith.constant 19 : i32
    %204 = tpu.dynamic_rotate %35 by %c19_i32_49 dim 1 : vector<8x128xf32>, i32 -> vector<8x128xf32>
    %cst_50 = arith.constant 0.000000e+00 : f32
    %205 = vector.broadcast %cst_50 : f32 to vector<8x128xf32>
    %206 = arith.select %203, %204, %205 : vector<8x128xi1>, vector<8x128xf32>
    %207 = vector.extract_strided_slice %32 {offsets = [0, 19], sizes = [8, 1], strides = [1, 1]} : vector<8x20xf32> to vector<8x1xf32>
    %208 = vector.broadcast %207 : vector<8x1xf32> to vector<8x128xf32>
    %209 = arith.mulf %208, %206 : vector<8x128xf32>
    %210 = arith.addf %201, %209 : vector<8x128xf32>
    %211 = vector.extract_strided_slice %210 {offsets = [0, 0], sizes = [4, 128], strides = [1, 1]} : vector<8x128xf32> to vector<4x128xf32>
    %212 = vector.extract_strided_slice %210 {offsets = [4, 0], sizes = [4, 128], strides = [1, 1]} : vector<8x128xf32> to vector<4x128xf32>
    %213 = arith.addf %211, %212 : vector<4x128xf32>
    %214 = vector.extract_strided_slice %213 {offsets = [3, 0], sizes = [1, 128], strides = [1, 1]} : vector<4x128xf32> to vector<1x128xf32>
    %215 = math.tanh %214 : vector<1x128xf32>
    %216 = vector.extract_strided_slice %213 {offsets = [2, 0], sizes = [1, 128], strides = [1, 1]} : vector<4x128xf32> to vector<1x128xf32>
    %217 = math.tanh %216 : vector<1x128xf32>
    %218 = vector.extract_strided_slice %213 {offsets = [1, 0], sizes = [1, 128], strides = [1, 1]} : vector<4x128xf32> to vector<1x128xf32>
    %c3_51 = arith.constant 3 : index
    %219 = memref.load %arg3[%c3_51] : memref<4xf32, #tpu.memory_space<smem>>
    %220 = vector.broadcast %219 : f32 to vector<1x128xf32>
    %221 = arith.mulf %215, %220 : vector<1x128xf32>
    %222 = arith.addf %218, %221 : vector<1x128xf32>
    %223 = math.tanh %222 : vector<1x128xf32>
    %224 = vector.extract_strided_slice %213 {offsets = [0, 0], sizes = [1, 128], strides = [1, 1]} : vector<4x128xf32> to vector<1x128xf32>
    %c1_52 = arith.constant 1 : index
    %225 = memref.load %arg3[%c1_52] : memref<4xf32, #tpu.memory_space<smem>>
    %226 = vector.broadcast %225 : f32 to vector<1x128xf32>
    %227 = arith.mulf %223, %226 : vector<1x128xf32>
    %228 = arith.addf %224, %227 : vector<1x128xf32>
    %c2_53 = arith.constant 2 : index
    %229 = memref.load %arg3[%c2_53] : memref<4xf32, #tpu.memory_space<smem>>
    %230 = vector.broadcast %229 : f32 to vector<1x128xf32>
    %231 = arith.mulf %217, %230 : vector<1x128xf32>
    %232 = arith.addf %228, %231 : vector<1x128xf32>
    %233 = math.tanh %232 : vector<1x128xf32>
    %c0_54 = arith.constant 0 : index
    %234 = memref.load %arg3[%c0_54] : memref<4xf32, #tpu.memory_space<smem>>
    %235 = vector.broadcast %234 : f32 to vector<1x128xf32>
    %236 = arith.mulf %233, %235 : vector<1x128xf32>
    %c0_55 = arith.constant 0 : index
    %237 = memref.load %arg4[%c0_55] : memref<1xf32, #tpu.memory_space<smem>>
    %238 = vector.broadcast %237 : f32 to vector<1x128xf32>
    %239 = arith.addf %236, %238 : vector<1x128xf32>
    %c0_56 = arith.constant 0 : index
    %c0_57 = arith.constant 0 : index
    %240 = vector.load %arg5[%c0_56, %c0_57] : memref<1x128xf32, #tpu.memory_space<vmem>>, vector<1x128xf32>
    tpu.vector_store %arg5[%c0_56, %c0_57], %239 {strides = array<i32>} : memref<1x128xf32, #tpu.memory_space<vmem>>, vector<1x128xf32>,
    return
  }
}

</mosaic_0001>

<bundles_post_ra>
// kernel: tpu_custom_call.1
= control target key start
LH: loop header
LB: loop body
LE: loop exit
PB: predicated region body
PF: predicated region fallthrough
CT: control target
= control target key end

     0   :  { %11 = vsyncpa [#allocation4], 0  ;;  %s827_s0 = inlined_call_operand.hbm [shape: f32[32,128], index: 0, kind: input, shape index: {}]   ;;  %s828_s1 = inlined_call_operand.hbm [shape: f32[8,32], index: 1, kind: input, shape index: {}]   ;;  %s829_s2 = inlined_call_operand.vmem [shape: f32[8,5], index: 2, kind: input, shape index: {}]   ;;  %s830_s3 = inlined_call_operand.vmem [shape: f32[4], index: 3, kind: input, shape index: {}]   ;;  %s831_s4 = inlined_call_operand.<no memory space> [shape: f32[1], index: 4, kind: input, shape index: {}]   ;;  %s832_s5 = inlined_call_operand.hbm [shape: f32[1,128], index: 5, kind: output, shape index: {}]  }
   0x1   :  { %12 = vsyncpa [#allocation8], 0 }
   0x2   :  { %13 = vsyncpa [#allocation6], 0 }
   0x3   :  { %14 = vsyncpa [#allocation5], 0  ;;  %s635_s18 = smov [#allocation3]   ;;  %s549_s22 = scalar_lea.hbm %s827_s0, 512 }
   0x4   :  { %s20_s19 = sshll.u32 %s635_s18, 4  ;;  %p550_p0 = scmp.ne.s32.totalorder %s827_s0, %s549_s22  ;;  %s21_s19 = int_to_ptr.vmem [resolvable:$true] %s20_s19 }
   0x5   :  { %p553_p1 = scmp.lt.u32.totalorder %s549_s22, %s827_s0 }
   0x7   :  { %p555_p2 = pnand %p553_p1, %p550_p0 }
   0x9   :  { %558 = shalt.err (!%p555_p2)
}
   0xa   :  { %s559_s27 = scalar_lea.vmem %s21_s19, 512  ;;  %p564_p4 = scmp.lt.s32.totalorder %s21_s19, %s21_s19 }
   0xb   :  { %p560_p3 = scmp.ne.s32.totalorder %s21_s19, %s559_s27  ;;  %p565_p5 = scmp.lt.s32.totalorder %s559_s27, %s559_s27 }
   0xd   :  { %p566_p6 = por %p565_p5, %p564_p4 }
   0xf   :  { %p567_p7 = pnand %p566_p6, %p560_p3 }
  0x11   :  { %570 = shalt.err (!%p567_p7)
}
  0x12   :  { %s636_s28 = smov 128   ;;  %s637_s29 = smov 8  }
  0x13   :  { %26 = dma.hbm_to_vmem [thread:$0]  %s827_s0, 512, %s21_s19, [#allocation4], %s636_s28, %s636_s28, %s637_s29  }
  0x14   :  { %s638_s7 = smov [#allocation7]   ;;  %s45_s11 = sshll.u32 %s830_s3, 4  ;;  %s46_s11 = int_to_ptr.vmem [resolvable:$true] %s45_s11 }
  0x15   :  { %s33_s8 = sshll.u32 %s638_s7, 4  ;;  %s571_s14 = scalar_lea.hbm %s828_s1, 128  ;;  %s34_s8 = int_to_ptr.vmem [resolvable:$true] %s33_s8 }
  0x16   :  { %p572_p8 = scmp.ne.s32.totalorder %s828_s1, %s571_s14  ;;  %p575_p9 = scmp.lt.u32.totalorder %s571_s14, %s828_s1 }
  0x18   :  { %p577_p10 = pnand %p575_p9, %p572_p8 }
  0x1a   :  { %580 = shalt.err (!%p577_p10)
}
  0x1b   :  { %s581_s0 = scalar_lea.vmem %s34_s8, 128  ;;  %p586_p12 = scmp.lt.s32.totalorder %s34_s8, %s34_s8 }
  0x1c   :  { %p582_p11 = scmp.ne.s32.totalorder %s34_s8, %s581_s0  ;;  %p587_p13 = scmp.lt.s32.totalorder %s581_s0, %s581_s0 }
  0x1e   :  { %p588_p0 = por %p587_p13, %p586_p12 }
  0x20   :  { %p589_p1 = pnand %p588_p0, %p582_p11 }
  0x22   :  { %592 = shalt.err (!%p589_p1)
}
  0x23   :  { %36 = dma.hbm_to_vmem [thread:$0]  %s828_s1, 128, %s34_s8, [#allocation8]  }
  0x24   :  { %s593_s20 = scalar_lea.vmem %s46_s11, 16  ;;  %p598_p3 = scmp.lt.s32.totalorder %s46_s11, %s46_s11 }
  0x25   :  { %p594_p2 = scmp.ne.s32.totalorder %s46_s11, %s593_s20  ;;  %p599_p4 = scmp.lt.s32.totalorder %s593_s20, %s593_s20 }
  0x27   :  { %p600_p5 = por %p599_p4, %p598_p3 }
  0x29   :  { %p601_p6 = pnand %p600_p5, %p594_p2 }
  0x2b   :  { %604 = shalt.err (!%p601_p6)
}
  0x2c   :  { %s639_s21 = smov [#allocation9]  }
  0x2d   :  { %48 = dma.vmem_to_smem %s46_s11, 16, %s639_s21, [#allocation6]  }
  0x2e   :  { %627 = dma.done.wait [#allocation4], 512  }
  0x2f   :  { %628 = vsyncadd [#allocation4], 4294966784 }
  0x30   :  { %629 = dma.done.wait [#allocation8], 128  }
  0x31   :  { %630 = vsyncadd [#allocation8], 4294967168 }
  0x32   :  { %631 = dma.done.wait [#allocation6], 16  }
  0x33   :  { %632 = vsyncadd [#allocation6], 4294967280 }
  0x34   :  { %60 = sfence }
  0x35   :  { %v108_v0 = vld [vmem:[#allocation3] sm:$0xff]  ;;  %v109_v1 = vld [vmem:[#allocation3 + $0x8] sm:$0xff]  ;;  %v110_v2 = vld [vmem:[#allocation3 + $0x10] sm:$0xff]  ;;  %v640_v3 = vmov 0.0|0.0   ;;  %vm641_vm0 = vmmov 0   ;;  %v642_v6 = vmov 0.0   ;;  %v61_v17 = vlaneseq }
  0x36   :  { %454 = vmatprep.subr.bf16.mxu0 %v640_v3  ;;  %v455_v4 = vpack.c.bf16 %v109_v1, %v108_v0  ;;  %v111_v5 = vld [vmem:[#allocation3 + $0x18] sm:$0xff]  ;;  %451 = vmatprep.mubr.msk.f32.mxu0 %vm641_vm0, %v642_v6  ;;  %v64_v7 = vld [vmem:[%s829_s2] sm:$0xff]  ;;  %v643_v8 = vmov 1   ;;  %v644_v11 = vmov 0   ;;  %vm112_vm1 = vcmask 261120   ;;  %s655_s2 = smov 2  }
  0x37   :  { %507 = vset.pattern.permute.xlu0 %v643_v8  ;;  %v65_v9 = vmul.f32 1.442695, %v64_v7  ;;  %v458_v10 = vpack.c.bf16 %v111_v5, %v110_v2  ;;  %509 = vset.pattern.permute.xlu1 %v644_v11  ;;  %v107_v12 = vld [vmem:[#allocation7] sm:$0xff]  ;;  %v645_v14 = vmov 2   ;;  %v646_v15 = vmov 3   ;;  %s657_s23 = smov 3  }
  0x38   :  { %456 = vmatpush3.bf16.msra.mxu0 %v455_v4  ;;  %v647_v16 = vmov 4   ;;  %v743_v18 = vand.u32 127, %v61_v17  ;;  %v648_v42 = vmov 19   ;;  %v649_v43 = vmov 5   ;;  %s658_s24 = smov 4   ;;  %s659_s25 = smov 1  }
  0x39   :  { %457 = vmatprep.subr.bf16.mxu0 %v640_v3  ;;  %533 = vpow2.f32 %v65_v9  ;;  %v650_v44 = vmov 6   ;;  %v651_v45 = vmov 7   ;;  %v652_v46 = vmov 8   ;;  %s661_s26 = smov 5   ;;  %s662_s27 = smov 6  }
  0x3a   :  { %v63_v20 = vcvt.s32.f32 %v743_v18  ;;  %v653_v47 = vmov 9   ;;  %v654_v48 = vmov 10   ;;  %v656_v51 = vmov 11   ;;  %s664_s28 = smov 7   ;;  %s667_s30 = smov 9  }
  0x3b   :  { %v660_v52 = vmov 12   ;;  %v663_v53 = vmov 13   ;;  %v665_v54 = vmov 14   ;;  %v666_v55 = vmov 15   ;;  %s669_s6 = smov 10   ;;  %s670_s7 = smov 11  }
  0x3c   :  { %459 = vmatpush3.bf16.msra.mxu0 %v458_v10  ;;  %v668_v56 = vmov 16   ;;  %v671_v57 = vmov 17   ;;  %v673_v58 = vmov 18   ;;  %s674_s8 = smov 13   ;;  %s675_s9 = smov 14   ;;  %vm202_vm2 = vcmp.ge.s32.totalorder %v743_v18, 2 }
  0x3d   :  { %s676_s10 = smov 18   ;;  %s677_s11 = smov 15   ;;  %vm192_vm3 = vcmp.ge.s32.totalorder %v743_v18, 1  ;;  %vm212_vm4 = vcmp.ge.s32.totalorder %v743_v18, 3  ;;  %vm222_vm5 = vcmp.ge.s32.totalorder %v743_v18, 4  ;;  %vm232_vm6 = vcmp.ge.s32.totalorder %v743_v18, 5 }
  0x3e   :  { %s678_s12 = smov 16   ;;  %s679_s13 = smov 17   ;;  %vm242_vm7 = vcmp.ge.s32.totalorder %v743_v18, 6  ;;  %vm252_vm8 = vcmp.ge.s32.totalorder %v743_v18, 7  ;;  %vm262_vm9 = vcmp.ge.s32.totalorder %v743_v18, 8  ;;  %vm272_vm10 = vcmp.ge.s32.totalorder %v743_v18, 9 }
  0x3f   :  { %452 = vmatmul.mubr.msk.f32.vlgmr.msra.gmra.mrb[0].mxu0 %vm112_vm1, %v107_v12  ;;  %s680_s14 = smov 19   ;;  %vm282_vm11 = vcmp.ge.s32.totalorder %v743_v18, 10  ;;  %vm292_vm12 = vcmp.ge.s32.totalorder %v743_v18, 11  ;;  %vm302_vm13 = vcmp.ge.s32.totalorder %v743_v18, 12  ;;  %vm312_vm14 = vcmp.ge.s32.totalorder %v743_v18, 13  ;;  %s435_s15 = sld [smem:[#allocation9 + $0x3]] }
  0x40   :  { %vm322_vm15 = vcmp.ge.s32.totalorder %v743_v18, 14  ;;  %vm332_vm0 = vcmp.ge.s32.totalorder %v743_v18, 15  ;;  %vm342_vm1 = vcmp.ge.s32.totalorder %v743_v18, 16  ;;  %s436_s16 = sld [smem:[#allocation9 + $0x1]]  ;;  %s437_s17 = sld [smem:[#allocation9 + $0x2]] }
  0x41   :  { %s410_s18 = sld [smem:[#allocation9]]  ;;  %s681_s19 = smov [#allocation10]  }
  0x42   :  { %s423_s20 = sshll.u32 %s681_s19, 4  ;;  %s424_s20 = int_to_ptr.vmem [resolvable:$true] %s423_s20 }
  0x43   :  { %v534_v13 = vpop.eup %533  ;;  %s605_s21 = scalar_lea.vmem %s424_s20, 16  ;;  %s609_s1 = scalar_lea.vmem %s424_s20, 32 }
  0x44   :  { %75 = vperm.xlu0 %507, %v534_v13   ;;  %69 = vperm.xlu1 %509, %v534_v13   ;;  %p606_p7 = scmp.ne.s32.totalorder %s424_s20, %s605_s21  ;;  %p610_p8 = scmp.lt.s32.totalorder %s424_s20, %s424_s20 }
  0x45   :  { %p611_p9 = scmp.lt.s32.totalorder %s609_s1, %s605_s21 }
  0x47   :  { %p612_p10 = por %p611_p9, %p610_p8 }
  0x48   :  { %508 = vset.pattern.permute.xlu0 %v645_v14  ;;  %510 = vset.pattern.permute.xlu1 %v646_v15 }
  0x49   :  { %92 = vperm.xlu0 %508, %v534_v13   ;;  %86 = vperm.xlu1 %510, %v64_v7   ;;  %p613_p11 = pnand %p612_p10, %p606_p7 }
  0x4d   :  { %511 = vset.pattern.permute.xlu1 %v647_v16  ;;  %512 = vset.pattern.permute.xlu0 %v644_v11 }
  0x4e   :  { %102 = vperm.xlu1 %511, %v64_v7  }
  0x52   :  { %513 = vset.pattern.permute.xlu1 %v643_v8 }
  0xc3   :  { %v76_v19 = vpop.permute.xlu0 %75  ;;  %v70_v21 = vpop.permute.xlu1 %69 }
  0xc4   :  { %535 = vrcp.f32 %v76_v19  ;;  %v72_v22 = vsub.f32 %v63_v20, %v70_v21 }
  0xc6   :  { %v73_v24 = vmax.f32 %v72_v22, 0.0 }
  0xc8   :  { %v93_v23 = vpop.permute.xlu0 %92  ;;  %v87_v33 = vpop.permute.xlu1 %86 }
  0xc9   :  { %537 = vrcp.f32 %v93_v23 }
  0xcd   :  { %v103_v37 = vpop.permute.xlu1 %102 }
  0xce   :  { %v536_v25 = vpop.eup %535 }
  0xcf   :  { %v79_v26 = vmul.f32 %v536_v25, %v73_v24 }
  0xd1   :  { %v80_v27 = vsub.f32 0.0, %v79_v26 }
  0xd3   :  { %v538_v28 = vpop.eup %537  ;;  %v81_v29 = vmul.f32 1.442695, %v80_v27 }
  0xd4   :  { %v96_v30 = vmul.f32 %v538_v28, %v73_v24 }
  0xd5   :  { %539 = vpow2.f32 %v81_v29 }
  0xd6   :  { %v97_v31 = vsub.f32 0.0, %v96_v30 }
  0xd8   :  { %v98_v32 = vmul.f32 1.442695, %v97_v31 }
  0xda   :  { %541 = vpow2.f32 %v98_v32 }
  0xdf   :  { %v540_v34 = vpop.eup %539 }
  0xe0   :  { %v83_v35 = vmul.f32 %v540_v34, %v79_v26 }
  0xe2   :  { %v89_v39 = vmul.f32 %v87_v33, %v83_v35 }
  0xe4   :  { %v542_v36 = vpop.eup %541 }
  0xe5   :  { %v100_v38 = vmul.f32 %v542_v36, %v96_v30 }
  0xe7   :  { %v105_v40 = vmul.f32 %v103_v37, %v100_v38 }
  0xe9   :  { %v746_v41 = vadd.f32 %v105_v40, %v89_v39 }
  0xeb   :  { %197 = vperm.xlu1 %513, %v746_v41   ;;  %188 = vperm.xlu0 %512, %v746_v41  }
  0xef   :  { %514 = vset.pattern.permute.xlu1 %v645_v14  ;;  %515 = vset.pattern.permute.xlu0 %v646_v15 }
  0xf0   :  { %207 = vperm.xlu1 %514, %v746_v41   ;;  %217 = vperm.xlu0 %515, %v746_v41  }
  0xf4   :  { %516 = vset.pattern.permute.xlu1 %v647_v16  ;;  %532 = vset.pattern.permute.xlu0 %v648_v42 }
  0xf5   :  { %227 = vperm.xlu1 %516, %v746_v41  }
  0xf9   :  { %517 = vset.pattern.permute.xlu1 %v649_v43 }
  0xfa   :  { %237 = vperm.xlu1 %517, %v746_v41  }
  0xfe   :  { %518 = vset.pattern.permute.xlu1 %v650_v44 }
  0xff   :  { %247 = vperm.xlu1 %518, %v746_v41  }
 0x103   :  { %519 = vset.pattern.permute.xlu1 %v651_v45 }
 0x104   :  { %257 = vperm.xlu1 %519, %v746_v41  }
 0x108   :  { %520 = vset.pattern.permute.xlu1 %v652_v46 }
 0x109   :  { %267 = vperm.xlu1 %520, %v746_v41  }
 0x10d   :  { %521 = vset.pattern.permute.xlu1 %v653_v47 }
 0x10e   :  { %277 = vperm.xlu1 %521, %v746_v41  }
 0x112   :  { %522 = vset.pattern.permute.xlu1 %v654_v48  ;;  %v759_v49 = vpop.f32.mrb[0].mxu0 }
 0x113   :  { %287 = vperm.xlu1 %522, %v746_v41   ;;  %203 = vrot.lane.b32.xlu0 %v759_v49, %s655_s2  ;;  %v453_v50 = vpop.f32.mrb[1].mxu0 }
 0x117   :  { %523 = vset.pattern.permute.xlu1 %v656_v51  ;;  %213 = vrot.lane.b32.xlu0 %v759_v49, %s657_s23 }
 0x118   :  { %297 = vperm.xlu1 %523, %v746_v41  }
 0x11b   :  { %223 = vrot.lane.b32.xlu0 %v759_v49, %s658_s24 }
 0x11c   :  { %193 = vrot.lane.b32.xlu1 %v759_v49, %s659_s25 }
 0x11d   :  { %524 = vset.pattern.permute.xlu1 %v660_v52 }
 0x11f   :  { %233 = vrot.lane.b32.xlu0 %v759_v49, %s661_s26 }
 0x120   :  { %307 = vperm.xlu1 %524, %v746_v41  }
 0x123   :  { %243 = vrot.lane.b32.xlu0 %v759_v49, %s662_s27 }
 0x124   :  { %525 = vset.pattern.permute.xlu1 %v663_v53 }
 0x125   :  { %317 = vperm.xlu1 %525, %v746_v41  }
 0x127   :  { %253 = vrot.lane.b32.xlu0 %v759_v49, %s664_s28 }
 0x129   :  { %526 = vset.pattern.permute.xlu1 %v665_v54 }
 0x12a   :  { %327 = vperm.xlu1 %526, %v746_v41  }
 0x12b   :  { %263 = vrot.lane.b32.xlu0 %v759_v49, %s637_s29  ;;  %s672_s29 = smov 12  }
 0x12e   :  { %527 = vset.pattern.permute.xlu1 %v666_v55 }
 0x12f   :  { %337 = vperm.xlu1 %527, %v746_v41   ;;  %273 = vrot.lane.b32.xlu0 %v759_v49, %s667_s30 }
 0x133   :  { %528 = vset.pattern.permute.xlu1 %v668_v56  ;;  %283 = vrot.lane.b32.xlu0 %v759_v49, %s669_s6 }
 0x134   :  { %347 = vperm.xlu1 %528, %v746_v41  }
 0x137   :  { %293 = vrot.lane.b32.xlu0 %v759_v49, %s670_s7 }
 0x138   :  { %529 = vset.pattern.permute.xlu1 %v671_v57 }
 0x139   :  { %357 = vperm.xlu1 %529, %v746_v41  }
 0x13b   :  { %303 = vrot.lane.b32.xlu0 %v759_v49, %s672_s29 }
 0x13d   :  { %530 = vset.pattern.permute.xlu1 %v673_v58 }
 0x13e   :  { %367 = vperm.xlu1 %530, %v746_v41  }
 0x13f   :  { %313 = vrot.lane.b32.xlu0 %v759_v49, %s674_s8 }
 0x142   :  { %531 = vset.pattern.permute.xlu1 %v648_v42 }
 0x143   :  { %377 = vperm.xlu1 %531, %v746_v41   ;;  %323 = vrot.lane.b32.xlu0 %v759_v49, %s675_s9 }
 0x147   :  { %363 = vrot.lane.b32.xlu1 %v759_v49, %s676_s10  ;;  %333 = vrot.lane.b32.xlu0 %v759_v49, %s677_s11 }
 0x14b   :  { %343 = vrot.lane.b32.xlu0 %v759_v49, %s678_s12 }
 0x14f   :  { %353 = vrot.lane.b32.xlu0 %v759_v49, %s679_s13 }
 0x153   :  { %373 = vrot.lane.b32.xlu0 %v759_v49, %s680_s14 }
 0x16a   :  { %v198_v59 = vpop.permute.xlu1 %197  ;;  %v189_v63 = vpop.permute.xlu0 %188 }
 0x16b   :  { %v191_v16 = vmul.f32 %v189_v63, %v759_v49 }
 0x16f   :  { %v208_v60 = vpop.permute.xlu1 %207  ;;  %v218_v1 = vpop.permute.xlu0 %217 }
 0x174   :  { %v228_v61 = vpop.permute.xlu1 %227 }
 0x179   :  { %v238_v62 = vpop.permute.xlu1 %237 }
 0x17e   :  { %v248_v0 = vpop.permute.xlu1 %247 }
 0x183   :  { %v258_v2 = vpop.permute.xlu1 %257 }
 0x185   :  { %v204_v3 = vpop.permute.xlu0 %203 }
 0x186   :  { %v205_v14 = vsel %vm202_vm2, %v204_v3, 0.0  ;;  %vm352_vm2 = vcmp.ge.s32.totalorder %v743_v18, 17 }
 0x187   :  { %v210_v21 = vmul.f32 %v208_v60, %v205_v14 }
 0x188   :  { %v268_v4 = vpop.permute.xlu1 %267 }
 0x189   :  { %v214_v5 = vpop.permute.xlu0 %213 }
 0x18a   :  { %v215_v20 = vsel %vm212_vm4, %v214_v5, 0.0  ;;  %vm372_vm4 = vcmp.ge.s32.totalorder %v743_v18, 19 }
 0x18b   :  { %v220_v25 = vmul.f32 %v218_v1, %v215_v20 }
 0x18d   :  { %v278_v6 = vpop.permute.xlu1 %277  ;;  %v224_v7 = vpop.permute.xlu0 %223 }
 0x18e   :  { %v225_v24 = vsel %vm222_vm5, %v224_v7, 0.0 }
 0x18f   :  { %v230_v29 = vmul.f32 %v228_v61, %v225_v24 }
 0x191   :  { %v234_v8 = vpop.permute.xlu0 %233 }
 0x192   :  { %v288_v9 = vpop.permute.xlu1 %287  ;;  %v235_v28 = vsel %vm232_vm6, %v234_v8, 0.0 }
 0x193   :  { %v240_v33 = vmul.f32 %v238_v62, %v235_v28 }
 0x195   :  { %v244_v10 = vpop.permute.xlu0 %243 }
 0x196   :  { %v245_v31 = vsel %vm242_vm7, %v244_v10, 0.0 }
 0x197   :  { %v298_v11 = vpop.permute.xlu1 %297  ;;  %v250_v37 = vmul.f32 %v248_v0, %v245_v31 }
 0x199   :  { %v254_v12 = vpop.permute.xlu0 %253 }
 0x19a   :  { %v255_v36 = vsel %vm252_vm8, %v254_v12, 0.0 }
 0x19b   :  { %v194_v13 = vpop.permute.xlu1 %193  ;;  %v260_v40 = vmul.f32 %v258_v2, %v255_v36 }
 0x19c   :  { %v195_v15 = vsel %vm192_vm3, %v194_v13, 0.0  ;;  %vm362_vm3 = vcmp.ge.s32.totalorder %v743_v18, 18  ;;  %v396_v18 = vstv %s436_s16 }
 0x19d   :  { %v200_v17 = vmul.f32 %v198_v59, %v195_v15  ;;  %v264_v19 = vpop.permute.xlu0 %263 }
 0x19e   :  { %v265_v39 = vsel %vm262_vm9, %v264_v19, 0.0 }
 0x19f   :  { %v201_v22 = vadd.f32 %v200_v17, %v191_v16  ;;  %v308_v23 = vpop.permute.xlu1 %307  ;;  %v270_v46 = vmul.f32 %v268_v4, %v265_v39 }
 0x1a1   :  { %v211_v26 = vadd.f32 %v210_v21, %v201_v22  ;;  %v274_v27 = vpop.permute.xlu0 %273 }
 0x1a2   :  { %v275_v44 = vsel %vm272_vm10, %v274_v27, 0.0 }
 0x1a3   :  { %v221_v30 = vadd.f32 %v220_v25, %v211_v26  ;;  %v280_v48 = vmul.f32 %v278_v6, %v275_v44 }
 0x1a4   :  { %v318_v32 = vpop.permute.xlu1 %317 }
 0x1a5   :  { %v231_v34 = vadd.f32 %v230_v29, %v221_v30  ;;  %v284_v35 = vpop.permute.xlu0 %283 }
 0x1a6   :  { %v285_v49 = vsel %vm282_vm11, %v284_v35, 0.0 }
 0x1a7   :  { %v241_v38 = vadd.f32 %v240_v33, %v231_v34  ;;  %v290_v53 = vmul.f32 %v288_v9, %v285_v49 }
 0x1a9   :  { %v251_v41 = vadd.f32 %v250_v37, %v241_v38  ;;  %v328_v42 = vpop.permute.xlu1 %327  ;;  %v294_v43 = vpop.permute.xlu0 %293  ;;  %v403_v37 = vstv %s437_s17 }
 0x1aa   :  { %v295_v54 = vsel %vm292_vm12, %v294_v43, 0.0 }
 0x1ab   :  { %v261_v45 = vadd.f32 %v260_v40, %v251_v41  ;;  %v300_v58 = vmul.f32 %v298_v11, %v295_v54 }
 0x1ad   :  { %v271_v47 = vadd.f32 %v270_v46, %v261_v45  ;;  %v304_v50 = vpop.permute.xlu0 %303  ;;  %v411_v45 = vstv %s410_s18 }
 0x1ae   :  { %v338_v51 = vpop.permute.xlu1 %337  ;;  %v305_v59 = vsel %vm302_vm13, %v304_v50, 0.0 }
 0x1af   :  { %v281_v52 = vadd.f32 %v280_v48, %v271_v47  ;;  %v310_v63 = vmul.f32 %v308_v23, %v305_v59  ;;  %v414_v47 = vstv %s831_s4 }
 0x1b1   :  { %v314_v55 = vpop.permute.xlu0 %313  ;;  %v291_v56 = vadd.f32 %v290_v53, %v281_v52 }
 0x1b2   :  { %v315_v62 = vsel %vm312_vm14, %v314_v55, 0.0 }
 0x1b3   :  { %v348_v57 = vpop.permute.xlu1 %347  ;;  %v301_v61 = vadd.f32 %v300_v58, %v291_v56  ;;  %v320_v3 = vmul.f32 %v318_v32, %v315_v62  ;;  %v388_v32 = vstv %s435_s15 }
 0x1b5   :  { %v324_v60 = vpop.permute.xlu0 %323  ;;  %v311_v2 = vadd.f32 %v310_v63, %v301_v61 }
 0x1b6   :  { %v325_v4 = vsel %vm322_vm15, %v324_v60, 0.0 }
 0x1b7   :  { %v321_v8 = vadd.f32 %v320_v3, %v311_v2  ;;  %v330_v9 = vmul.f32 %v328_v42, %v325_v4 }
 0x1b8   :  { %v358_v0 = vpop.permute.xlu1 %357 }
 0x1b9   :  { %v334_v1 = vpop.permute.xlu0 %333  ;;  %v331_v13 = vadd.f32 %v330_v9, %v321_v8 }
 0x1ba   :  { %v335_v5 = vsel %vm332_vm0, %v334_v1, 0.0 }
 0x1bb   :  { %v340_v11 = vmul.f32 %v338_v51, %v335_v5 }
 0x1bd   :  { %v368_v6 = vpop.permute.xlu1 %367  ;;  %v344_v7 = vpop.permute.xlu0 %343  ;;  %v341_v17 = vadd.f32 %v340_v11, %v331_v13 }
 0x1be   :  { %v345_v10 = vsel %vm342_vm1, %v344_v7, 0.0 }
 0x1bf   :  { %v350_v14 = vmul.f32 %v348_v57, %v345_v10 }
 0x1c1   :  { %v354_v12 = vpop.permute.xlu0 %353  ;;  %v351_v21 = vadd.f32 %v350_v14, %v341_v17 }
 0x1c2   :  { %v378_v15 = vpop.permute.xlu1 %377  ;;  %v355_v16 = vsel %vm352_vm2, %v354_v12, 0.0 }
 0x1c3   :  { %v360_v19 = vmul.f32 %v358_v0, %v355_v16 }
 0x1c5   :  { %v374_v20 = vpop.permute.xlu0 %373  ;;  %v361_v25 = vadd.f32 %v360_v19, %v351_v21 }
 0x1c6   :  { %v364_v22 = vpop.permute.xlu1 %363  ;;  %v375_v24 = vsel %vm372_vm4, %v374_v20, 0.0 }
 0x1c7   :  { %v365_v23 = vsel %vm362_vm3, %v364_v22, 0.0  ;;  %v380_v28 = vmul.f32 %v378_v15, %v375_v24 }
 0x1c8   :  { %v370_v26 = vmul.f32 %v368_v6, %v365_v23 }
 0x1ca   :  { %v371_v27 = vadd.f32 %v370_v26, %v361_v25 }
 0x1cc   :  { %v381_v29 = vadd.f32 %v380_v28, %v371_v27 }
 0x1ce   :  { %v383_v30 = vrot.slane %v381_v29, 4 }
 0x1d0   :  { %v385_v31 = vadd.f32 %v383_v30, %v381_v29 }
 0x1d2   :  { %543 = vtanh.f32 %v385_v31 }
 0x1dc   :  { %v544_v33 = vpop.eup %543 }
 0x1dd   :  { %v389_v34 = vmul.f32 %v544_v33, %v388_v32  ;;  %v404_v40 = vmul.f32 %v544_v33, %v403_v37 }
 0x1df   :  { %v391_v35 = vrot.slane %v389_v34, 2  ;;  %v406_v43 = vrot.slane %v404_v40, 2 }
 0x1e1   :  { %v393_v36 = vadd.f32 %v391_v35, %v385_v31 }
 0x1e3   :  { %545 = vtanh.f32 %v393_v36 }
 0x1ed   :  { %v546_v38 = vpop.eup %545 }
 0x1ee   :  { %v397_v39 = vmul.f32 %v546_v38, %v396_v18 }
 0x1f0   :  { %v399_v41 = vrot.slane %v397_v39, 1 }
 0x1f2   :  { %v401_v42 = vadd.f32 %v399_v41, %v385_v31 }
 0x1f4   :  { %v408_v44 = vadd.f32 %v406_v43, %v401_v42 }
 0x1f6   :  { %547 = vtanh.f32 %v408_v44 }
 0x200   :  { %v548_v46 = vpop.eup %547 }
 0x201   :  { %v412_v48 = vmul.f32 %v548_v46, %v411_v45 }
 0x203   :  { %v415_v49 = vadd.f32 %v414_v47, %v412_v48 }
 0x205   :  { %416 = vst [vmem:[#allocation10] sm:$0x1] %v415_v49 }
 0x206   :  { %616 = shalt.err (!%p613_p11)
}
 0x207   :  { %s617_s23 = scalar_lea.hbm %s832_s5, 16 }
 0x208   :  { %p618_p12 = scmp.ne.s32.totalorder %s832_s5, %s617_s23  ;;  %p621_p13 = scmp.lt.u32.totalorder %s617_s23, %s832_s5 }
 0x20a   :  { %p623_p0 = pnand %p621_p13, %p618_p12 }
 0x20c   :  { %626 = shalt.err (!%p623_p0)
}
 0x20d   :  { %426 = dma.vmem_to_hbm [thread:$0]  %s424_s20, 16, %s832_s5, [#allocation5]  }
 0x20e   :  { %633 = dma.done.wait [#allocation5], 16  }
 0x20f   :  { %634 = vsyncadd [#allocation5], 4294967280 }
 0x210   :  { %430 = vsyncpa [#allocation4], 1 }
 0x211   :  { %431 = vsyncpa [#allocation8], 1 }
 0x212   :  { %432 = vsyncpa [#allocation5], 1 }
 0x213   :  { %433 = vsyncpa [#allocation6], 1 }

</bundles_post_ra>
